<compile_context>
chip_gen: v7x
topology: tpu7x:2x2x1
jax: 0.10.0
libtpu: 0.0.40
codegen_flags: <defaults>
</compile_context>

<pallas_src>
import functools

import jax
import jax.numpy as jnp
from jax.experimental import pallas as pl
from jax.experimental.pallas import tpu as pltpu


_MAX_TILE_PACKED = 1024  # packed rows per grid step (= 4 * 1024 original rows at P=4)


def _round_up(x, m):
    return ((x + m - 1) // m) * m


def _cdiv(a, b):
    return -(-a // b)


def _pack_factor(d_out):
    """Smallest power-of-two P (<=8) such that P*d_out reaches a 128-lane vreg."""
    p = 1
    while p * d_out < 128 and p < 8:
        p *= 2
    return p


def _choose_tile(n_packed):
    """Packed-row tile: multiple of 8, <= _MAX_TILE_PACKED, and >=2 grid steps
    whenever the problem is big enough (v7x 2-TC sharding)."""
    if n_packed <= 8:
        return n_packed                      # single block == full extent (allowed)
    half = _cdiv(n_packed, 2)
    return min(_MAX_TILE_PACKED, _round_up(half, 8))


def _block_diag(block, p):
    """Replicate a (r, c) block p times along the diagonal -> (p*r, p*c)."""
    r, c = block.shape
    out = jnp.zeros((p, r, p, c), block.dtype)
    for q in range(p):
        out = out.at[q, :, q, :].set(block)
    return out.reshape(p * r, p * c)


# ----------------------------- Pallas kernel ---------------------------------
def _mlp_kernel(pack, action_dim, obs_ref, act_ref, w1o_ref, w1a_ref,
                w2_ref, b2_ref, o_ref):
    # obs: (T, P*L) f32/bf16   act: (T, P) i32
    # w1o: (P*L, P*H) bf16     w1a: (P*A, P*H) bf16  (b1 folded in)
    # w2:  (P*H, P*O) bf16     b2:  (1, P*O) f32     o: (T, P*O) f32
    obs = obs_ref[...].astype(jnp.bfloat16)
    act = act_ref[...]
    t = obs.shape[0]
    pa = pack * action_dim

    # Packed one-hot, built in registers (never touches HBM).  Group p owns lanes
    # [p*A, (p+1)*A).  Invalid / out-of-range actions give an all-zero group
    # (matches jax.nn.one_hot; also keeps padded garbage rows from cross-talking).
    lane = jax.lax.broadcasted_iota(jnp.int32, (t, pa), 1)
    oh = jnp.zeros((t, pa), jnp.float32)
    for p in range(pack):
        ap = act[:, p:p + 1]                              # (T, 1)
        valid = (ap >= 0) & (ap < action_dim)
        oh = oh + jnp.where(valid & (lane == ap + p * action_dim), 1.0, 0.0)
    act_oh = oh.astype(jnp.bfloat16)

    # Layer 1 (b1 already folded into w1a): bf16 MXU operands, f32 accumulation.
    h = jnp.dot(obs, w1o_ref[...], preferred_element_type=jnp.float32)
    h = h + jnp.dot(act_oh, w1a_ref[...], preferred_element_type=jnp.float32)
    h = jnp.maximum(h, 0.0)

    # Layer 2: lane-dense (T, P*O) result -> unmasked full-width stores.
    y = jnp.dot(h.astype(jnp.bfloat16), w2_ref[...],
                preferred_element_type=jnp.float32)
    o_ref[...] = (y + b2_ref[...]).astype(o_ref.dtype)


def _latent_transform_pallas(obs2, act1, w1o_bd, w1a_bd, w2_bd, b2_bd,
                             pack, action_dim, d_out):
    n, latent = obs2.shape
    p_lanes = pack * latent
    po = pack * d_out

    # Pad rows only up to a multiple of the pack factor (<= pack-1 rows; avoids the
    # old full-tile-sized jnp.pad HBM copy).
    n_pad = _round_up(max(n, pack), pack)
    if n_pad != n:
        obs2 = jnp.pad(obs2, ((0, n_pad - n), (0, 0)))
        act1 = jnp.pad(act1, ((0, n_pad - n),))
    n_packed = n_pad // pack

    # Lane-dense packing: contiguous row-major reshapes (bitcasts, no HBM traffic).
    obs_p = obs2.reshape(n_packed, p_lanes)
    act_p = act1.reshape(n_packed, pack)

    tile_r = _choose_tile(n_packed)
    grid = (_cdiv(n_packed, tile_r),)

    flops = 2 * n_packed * (w1o_bd.shape[0] * w1o_bd.shape[1]
                            + w1a_bd.shape[0] * w1a_bd.shape[1]
                            + w2_bd.shape[0] * w2_bd.shape[1])
    bytes_accessed = (
        n_pad * latent * obs_p.dtype.itemsize      # obs in
        + n_pad * 4                                # act in (i32)
        + n_pad * d_out * 4                        # out (f32)
        + (w1o_bd.size + w1a_bd.size + w2_bd.size) * 2
        + b2_bd.size * 4
    )

    y_packed = pl.pallas_call(
        functools.partial(_mlp_kernel, pack, action_dim),
        out_shape=jax.ShapeDtypeStruct((n_packed, po), jnp.float32),
        grid_spec=pl.GridSpec(
            grid=grid,
            in_specs=[
                pl.BlockSpec((tile_r, p_lanes), lambda i: (i, 0)),    # obs tile
                pl.BlockSpec((tile_r, pack), lambda i: (i, 0)),       # act tile
                pl.BlockSpec(w1o_bd.shape, lambda i: (0, 0)),         # resident weights
                pl.BlockSpec(w1a_bd.shape, lambda i: (0, 0)),
                pl.BlockSpec(w2_bd.shape, lambda i: (0, 0)),
                pl.BlockSpec(b2_bd.shape, lambda i: (0, 0)),
            ],
            out_specs=pl.BlockSpec((tile_r, po), lambda i: (i, 0)),
        ),
        compiler_params=pltpu.CompilerParams(
            dimension_semantics=("parallel",),   # shard row tiles across TCs on v7x
        ),
        cost_estimate=pl.CostEstimate(
            flops=flops, transcendentals=0, bytes_accessed=bytes_accessed),
    )(obs_p, act_p, w1o_bd, w1a_bd, w2_bd, b2_bd)

    # Unpack: contiguous row-major reshape back to (n_pad, d_out), drop pad rows.
    return y_packed.reshape(n_pad, d_out)[:n]


# ------------------------------ module wrapper --------------------------------
class LatentTransform:
    """Predicts transition based on state and action (Pallas version)."""

    def __init__(self, latent_dim, output_dim, action_dim=4, key=None):
        self.latent_dim = latent_dim
        self.output_dim = output_dim
        self.action_dim = action_dim
        hidden = 64
        self.hidden = hidden
        in_dim = latent_dim + action_dim
        if key is None:
            key = jax.random.PRNGKey(0)
        k1, k2, k3, k4 = jax.random.split(key, 4)
        # PyTorch-style uniform(-1/sqrt(fan_in), 1/sqrt(fan_in)) init (deterministic).
        lim1 = 1.0 / jnp.sqrt(in_dim)
        lim2 = 1.0 / jnp.sqrt(hidden)
        self.w1 = jax.random.uniform(k1, (in_dim, hidden), jnp.float32, -lim1, lim1)
        self.b1 = jax.random.uniform(k2, (hidden,), jnp.float32, -lim1, lim1)
        self.w2 = jax.random.uniform(k3, (hidden, output_dim), jnp.float32, -lim2, lim2)
        self.b2 = jax.random.uniform(k4, (output_dim,), jnp.float32, -lim2, lim2)

        # Kernel-side weights: pack factor so pack*output_dim reaches 128 lanes,
        # b1 folded into the action weights (one-hot rows sum to exactly 1),
        # block-diagonal replication for the packed-row layout, bf16 for the MXU.
        pack = _pack_factor(output_dim)
        self.pack = pack
        w1_obs = self.w1[:latent_dim]                      # (L, H)
        w1_act_b1 = self.w1[latent_dim:] + self.b1[None, :]  # (A, H), b1 folded
        self.w1o_bd = _block_diag(w1_obs, pack).astype(jnp.bfloat16)      # (P*L, P*H)
        self.w1a_bd = _block_diag(w1_act_b1, pack).astype(jnp.bfloat16)   # (P*A, P*H)
        self.w2_bd = _block_diag(self.w2, pack).astype(jnp.bfloat16)      # (P*H, P*O)
        self.b2_bd = jnp.tile(self.b2, pack).reshape(1, -1)               # (1, P*O) f32

    def __call__(self, obs, act):
        # obs: (..., latent_dim) float ; act: (...) int
        assert obs.shape[:-1] == act.shape, "obs leading dims must match act shape"
        lead = obs.shape[:-1]
        obs2 = obs.reshape(-1, self.latent_dim)
        if obs2.dtype not in (jnp.float32, jnp.bfloat16):
            obs2 = obs2.astype(jnp.float32)   # only cast if the producer gave an odd dtype
        act1 = act.reshape(-1).astype(jnp.int32)
        y2 = _latent_transform_pallas(
            obs2, act1, self.w1o_bd, self.w1a_bd, self.w2_bd, self.b2_bd,
            self.pack, self.action_dim, self.output_dim)
        return y2.reshape(*lead, self.output_dim)


# ------------------------------ reference (pure JAX, f32) ----------------------
def _reference(model, obs, act):
    act_oh = jax.nn.one_hot(act, model.action_dim, dtype=jnp.float32)
    x = jnp.concatenate([obs, act_oh], axis=-1)
    h = jnp.maximum(x @ model.w1 + model.b1, 0.0)
    return h @ model.w2 + model.b2


if __name__ == "__main__":
    key = jax.random.PRNGKey(0)
    k_obs, k_act, k_params = jax.random.split(key, 3)

    batch, seq = 2, 8
    latent_dim, output_dim, action_dim = 32, 32, 4

    obs = jax.random.normal(k_obs, (batch, seq, latent_dim), dtype=jnp.float32)
    act = jax.random.randint(k_act, (batch, seq), 0, action_dim, dtype=jnp.int32)

    model = LatentTransform(latent_dim, output_dim, action_dim, key=k_params)

    out = model(obs, act)
    out = jax.block_until_ready(out)

    ref = _reference(model, obs, act)
    assert out.shape == (batch, seq, output_dim)
    # bf16 MXU operands (f32 accumulation) -> loosened tolerance vs the f32 reference.
    assert jnp.allclose(out, ref, atol=3e-2, rtol=3e-2), "mismatch vs pure-JAX reference"

    print("KERNEL_OK")
</pallas_src>

<mosaic_0001>
module attributes {stable_mosaic.version = 11 : i64} {
  func.func @_mlp_kernel(%arg0: i32, %arg1: memref<4x128xf32, #tpu.memory_space<vmem>>, %arg2: memref<4x4xi32, #tpu.memory_space<vmem>>, %arg3: memref<128x256xbf16, #tpu.memory_space<vmem>>, %arg4: memref<16x256xbf16, #tpu.memory_space<vmem>>, %arg5: memref<256x128xbf16, #tpu.memory_space<vmem>>, %arg6: memref<1x128xf32, #tpu.memory_space<vmem>>, %arg7: memref<4x128xf32, #tpu.memory_space<vmem>>) attributes {dimension_semantics = [#tpu.dimension_semantics<parallel>], iteration_bounds = array<i64: 1>, scalar_prefetch = 0 : i64, scratch_operands = 0 : i64, tpu.core_type = #tpu.core_type<tc>, window_params = [{transform_indices = @transform_0, window_bounds = array<i64: 4, 128>}, {transform_indices = @transform_1, window_bounds = array<i64: 4, 4>}, {pipeline_mode = #tpu.pipeline_mode<synchronous>, transform_indices = @transform_2, window_bounds = array<i64: 128, 256>}, {pipeline_mode = #tpu.pipeline_mode<synchronous>, transform_indices = @transform_3, window_bounds = array<i64: 16, 256>}, {pipeline_mode = #tpu.pipeline_mode<synchronous>, transform_indices = @transform_4, window_bounds = array<i64: 256, 128>}, {pipeline_mode = #tpu.pipeline_mode<synchronous>, transform_indices = @transform_5, window_bounds = array<i64: 1, 128>}, {transform_indices = @transform_6, window_bounds = array<i64: 4, 128>}]} {
    %c0 = arith.constant 0 : index
    %c0_0 = arith.constant 0 : index
    %0 = vector.load %arg1[%c0, %c0_0] : memref<4x128xf32, #tpu.memory_space<vmem>>, vector<4x128xf32>
    %1 = arith.truncf %0 : vector<4x128xf32> to vector<4x128xbf16>
    %c0_1 = arith.constant 0 : index
    %c0_2 = arith.constant 0 : index
    %2 = vector.load %arg2[%c0_1, %c0_2] : memref<4x4xi32, #tpu.memory_space<vmem>>, vector<4x4xi32>
    %3 = tpu.iota {dimensions = array<i32: 1>} : vector<4x16xi32>
    %cst = arith.constant 0.000000e+00 : f32
    %4 = vector.broadcast %cst : f32 to vector<4x16xf32>
    %5 = vector.extract_strided_slice %2 {offsets = [0, 0], sizes = [4, 1], strides = [1, 1]} : vector<4x4xi32> to vector<4x1xi32>
    %c0_i32 = arith.constant 0 : i32
    %6 = vector.broadcast %c0_i32 : i32 to vector<4x1xi32>
    %7 = arith.cmpi sge, %5, %6 : vector<4x1xi32>
    %c4_i32 = arith.constant 4 : i32
    %8 = vector.broadcast %c4_i32 : i32 to vector<4x1xi32>
    %9 = arith.cmpi slt, %5, %8 : vector<4x1xi32>
    %10 = arith.andi %7, %9 : vector<4x1xi1>
    %c0_i32_3 = arith.constant 0 : i32
    %11 = vector.broadcast %c0_i32_3 : i32 to vector<4x1xi32>
    %12 = arith.addi %5, %11 : vector<4x1xi32>
    %13 = vector.broadcast %12 : vector<4x1xi32> to vector<4x16xi32>
    %14 = arith.cmpi eq, %3, %13 : vector<4x16xi32>
    %15 = vector.broadcast %10 : vector<4x1xi1> to vector<4x16xi1>
    %16 = arith.andi %15, %14 : vector<4x16xi1>
    %cst_4 = arith.constant 1.000000e+00 : f32
    %cst_5 = arith.constant 0.000000e+00 : f32
    %17 = vector.broadcast %cst_4 : f32 to vector<4x16xf32>
    %18 = vector.broadcast %cst_5 : f32 to vector<4x16xf32>
    %19 = arith.select %16, %17, %18 : vector<4x16xi1>, vector<4x16xf32>
    %20 = arith.addf %4, %19 : vector<4x16xf32>
    %21 = vector.extract_strided_slice %2 {offsets = [0, 1], sizes = [4, 1], strides = [1, 1]} : vector<4x4xi32> to vector<4x1xi32>
    %c0_i32_6 = arith.constant 0 : i32
    %22 = vector.broadcast %c0_i32_6 : i32 to vector<4x1xi32>
    %23 = arith.cmpi sge, %21, %22 : vector<4x1xi32>
    %c4_i32_7 = arith.constant 4 : i32
    %24 = vector.broadcast %c4_i32_7 : i32 to vector<4x1xi32>
    %25 = arith.cmpi slt, %21, %24 : vector<4x1xi32>
    %26 = arith.andi %23, %25 : vector<4x1xi1>
    %c4_i32_8 = arith.constant 4 : i32
    %27 = vector.broadcast %c4_i32_8 : i32 to vector<4x1xi32>
    %28 = arith.addi %21, %27 : vector<4x1xi32>
    %29 = vector.broadcast %28 : vector<4x1xi32> to vector<4x16xi32>
    %30 = arith.cmpi eq, %3, %29 : vector<4x16xi32>
    %31 = vector.broadcast %26 : vector<4x1xi1> to vector<4x16xi1>
    %32 = arith.andi %31, %30 : vector<4x16xi1>
    %cst_9 = arith.constant 1.000000e+00 : f32
    %cst_10 = arith.constant 0.000000e+00 : f32
    %33 = vector.broadcast %cst_9 : f32 to vector<4x16xf32>
    %34 = vector.broadcast %cst_10 : f32 to vector<4x16xf32>
    %35 = arith.select %32, %33, %34 : vector<4x16xi1>, vector<4x16xf32>
    %36 = arith.addf %20, %35 : vector<4x16xf32>
    %37 = vector.extract_strided_slice %2 {offsets = [0, 2], sizes = [4, 1], strides = [1, 1]} : vector<4x4xi32> to vector<4x1xi32>
    %c0_i32_11 = arith.constant 0 : i32
    %38 = vector.broadcast %c0_i32_11 : i32 to vector<4x1xi32>
    %39 = arith.cmpi sge, %37, %38 : vector<4x1xi32>
    %c4_i32_12 = arith.constant 4 : i32
    %40 = vector.broadcast %c4_i32_12 : i32 to vector<4x1xi32>
    %41 = arith.cmpi slt, %37, %40 : vector<4x1xi32>
    %42 = arith.andi %39, %41 : vector<4x1xi1>
    %c8_i32 = arith.constant 8 : i32
    %43 = vector.broadcast %c8_i32 : i32 to vector<4x1xi32>
    %44 = arith.addi %37, %43 : vector<4x1xi32>
    %45 = vector.broadcast %44 : vector<4x1xi32> to vector<4x16xi32>
    %46 = arith.cmpi eq, %3, %45 : vector<4x16xi32>
    %47 = vector.broadcast %42 : vector<4x1xi1> to vector<4x16xi1>
    %48 = arith.andi %47, %46 : vector<4x16xi1>
    %cst_13 = arith.constant 1.000000e+00 : f32
    %cst_14 = arith.constant 0.000000e+00 : f32
    %49 = vector.broadcast %cst_13 : f32 to vector<4x16xf32>
    %50 = vector.broadcast %cst_14 : f32 to vector<4x16xf32>
    %51 = arith.select %48, %49, %50 : vector<4x16xi1>, vector<4x16xf32>
    %52 = arith.addf %36, %51 : vector<4x16xf32>
    %53 = vector.extract_strided_slice %2 {offsets = [0, 3], sizes = [4, 1], strides = [1, 1]} : vector<4x4xi32> to vector<4x1xi32>
    %c0_i32_15 = arith.constant 0 : i32
    %54 = vector.broadcast %c0_i32_15 : i32 to vector<4x1xi32>
    %55 = arith.cmpi sge, %53, %54 : vector<4x1xi32>
    %c4_i32_16 = arith.constant 4 : i32
    %56 = vector.broadcast %c4_i32_16 : i32 to vector<4x1xi32>
    %57 = arith.cmpi slt, %53, %56 : vector<4x1xi32>
    %58 = arith.andi %55, %57 : vector<4x1xi1>
    %c12_i32 = arith.constant 12 : i32
    %59 = vector.broadcast %c12_i32 : i32 to vector<4x1xi32>
    %60 = arith.addi %53, %59 : vector<4x1xi32>
    %61 = vector.broadcast %60 : vector<4x1xi32> to vector<4x16xi32>
    %62 = arith.cmpi eq, %3, %61 : vector<4x16xi32>
    %63 = vector.broadcast %58 : vector<4x1xi1> to vector<4x16xi1>
    %64 = arith.andi %63, %62 : vector<4x16xi1>
    %cst_17 = arith.constant 1.000000e+00 : f32
    %cst_18 = arith.constant 0.000000e+00 : f32
    %65 = vector.broadcast %cst_17 : f32 to vector<4x16xf32>
    %66 = vector.broadcast %cst_18 : f32 to vector<4x16xf32>
    %67 = arith.select %64, %65, %66 : vector<4x16xi1>, vector<4x16xf32>
    %68 = arith.addf %52, %67 : vector<4x16xf32>
    %69 = arith.truncf %68 : vector<4x16xf32> to vector<4x16xbf16>
    %c0_19 = arith.constant 0 : index
    %c0_20 = arith.constant 0 : index
    %70 = vector.load %arg3[%c0_19, %c0_20] : memref<128x256xbf16, #tpu.memory_space<vmem>>, vector<128x256xbf16>
    %cst_21 = arith.constant dense<0.000000e+00> : vector<4x256xf32>
    %71 = tpu.matmul %1, %70, %cst_21 {dimension_numbers = #tpu.dot_dimension_numbers<[1], [0], [0], [1], [0, 0, 1, 1], [], []>} : vector<4x128xbf16>, vector<128x256xbf16>, vector<4x256xf32> -> vector<4x256xf32>
    %c0_22 = arith.constant 0 : index
    %c0_23 = arith.constant 0 : index
    %72 = vector.load %arg4[%c0_22, %c0_23] : memref<16x256xbf16, #tpu.memory_space<vmem>>, vector<16x256xbf16>
    %cst_24 = arith.constant dense<0.000000e+00> : vector<4x256xf32>
    %73 = tpu.matmul %69, %72, %cst_24 {dimension_numbers = #tpu.dot_dimension_numbers<[1], [0], [0], [1], [0, 0, 1, 1], [], []>} : vector<4x16xbf16>, vector<16x256xbf16>, vector<4x256xf32> -> vector<4x256xf32>
    %74 = arith.addf %71, %73 : vector<4x256xf32>
    %cst_25 = arith.constant 0.000000e+00 : f32
    %75 = vector.broadcast %cst_25 : f32 to vector<4x256xf32>
    %76 = arith.maximumf %74, %75 : vector<4x256xf32>
    %77 = arith.truncf %76 : vector<4x256xf32> to vector<4x256xbf16>
    %c0_26 = arith.constant 0 : index
    %c0_27 = arith.constant 0 : index
    %78 = vector.load %arg5[%c0_26, %c0_27] : memref<256x128xbf16, #tpu.memory_space<vmem>>, vector<256x128xbf16>
    %cst_28 = arith.constant dense<0.000000e+00> : vector<4x128xf32>
    %79 = tpu.matmul %77, %78, %cst_28 {dimension_numbers = #tpu.dot_dimension_numbers<[1], [0], [0], [1], [0, 0, 1, 1], [], []>} : vector<4x256xbf16>, vector<256x128xbf16>, vector<4x128xf32> -> vector<4x128xf32>
    %c0_29 = arith.constant 0 : index
    %c0_30 = arith.constant 0 : index
    %80 = vector.load %arg6[%c0_29, %c0_30] : memref<1x128xf32, #tpu.memory_space<vmem>>, vector<1x128xf32>
    %81 = vector.broadcast %80 : vector<1x128xf32> to vector<4x128xf32>
    %82 = arith.addf %79, %81 : vector<4x128xf32>
    %c0_31 = arith.constant 0 : index
    %c0_32 = arith.constant 0 : index
    %83 = vector.load %arg7[%c0_31, %c0_32] : memref<4x128xf32, #tpu.memory_space<vmem>>, vector<4x128xf32>
    tpu.vector_store %arg7[%c0_31, %c0_32], %82 {strides = array<i32>} : memref<4x128xf32, #tpu.memory_space<vmem>>, vector<4x128xf32>,
    return
  }
  func.func @transform_0(%arg0: i32) -> (i32, i32) {
    %c0_i32 = arith.constant 0 : i32
    %c0_i32_0 = arith.constant 0 : i32
    return %arg0, %c0_i32 : i32, i32
  }
  func.func @transform_1(%arg0: i32) -> (i32, i32) {
    %c0_i32 = arith.constant 0 : i32
    %c0_i32_0 = arith.constant 0 : i32
    return %arg0, %c0_i32 : i32, i32
  }
  func.func @transform_2(%arg0: i32) -> (i32, i32) {
    %c0_i32 = arith.constant 0 : i32
    %c0_i32_0 = arith.constant 0 : i32
    %c0_i32_1 = arith.constant 0 : i32
    return %c0_i32, %c0_i32_0 : i32, i32
  }
  func.func @transform_3(%arg0: i32) -> (i32, i32) {
    %c0_i32 = arith.constant 0 : i32
    %c0_i32_0 = arith.constant 0 : i32
    %c0_i32_1 = arith.constant 0 : i32
    return %c0_i32, %c0_i32_0 : i32, i32
  }
  func.func @transform_4(%arg0: i32) -> (i32, i32) {
    %c0_i32 = arith.constant 0 : i32
    %c0_i32_0 = arith.constant 0 : i32
    %c0_i32_1 = arith.constant 0 : i32
    return %c0_i32, %c0_i32_0 : i32, i32
  }
  func.func @transform_5(%arg0: i32) -> (i32, i32) {
    %c0_i32 = arith.constant 0 : i32
    %c0_i32_0 = arith.constant 0 : i32
    %c0_i32_1 = arith.constant 0 : i32
    return %c0_i32, %c0_i32_0 : i32, i32
  }
  func.func @transform_6(%arg0: i32) -> (i32, i32) {
    %c0_i32 = arith.constant 0 : i32
    %c0_i32_0 = arith.constant 0 : i32
    return %arg0, %c0_i32 : i32, i32
  }
}

</mosaic_0001>

<bundles_post_ra>
// kernel: tpu_custom_call.1
= control target key start
LH: loop header
LB: loop body
LE: loop exit
PB: predicated region body
PF: predicated region fallthrough
CT: control target
= control target key end

     0   :  { %11 = vsyncpa [#allocation3], 0  ;;  %s938_s0 = inlined_call_operand.hbm [shape: f32[4,128], index: 0, kind: input, shape index: {}]   ;;  %s939_s1 = inlined_call_operand.hbm [shape: s32[4,4], index: 1, kind: input, shape index: {}]   ;;  %s940_s2 = inlined_call_operand.hbm [shape: bf16[128,256], index: 2, kind: input, shape index: {}]   ;;  %s941_s3 = inlined_call_operand.hbm [shape: bf16[16,256], index: 3, kind: input, shape index: {}]   ;;  %s942_s4 = inlined_call_operand.hbm [shape: bf16[256,128], index: 4, kind: input, shape index: {}]   ;;  %s943_s5 = inlined_call_operand.vmem [shape: f32[1,128], index: 5, kind: input, shape index: {}]   ;;  %s944_s6 = inlined_call_operand.hbm [shape: f32[4,128], index: 6, kind: output, shape index: {}]  }
   0x1   :  { %12 = vsyncpa [#allocation6], 0 }
   0x2   :  { %13 = vsyncpa [#allocation9], 0 }
   0x3   :  { %14 = vsyncpa [#allocation4], 0  ;;  %s803_s21 = smov [#allocation5]   ;;  %s663_s25 = scalar_lea.hbm %s939_s1, 64 }
   0x4   :  { %s31_s22 = sshll.u32 %s803_s21, 4  ;;  %p664_p0 = scmp.ne.s32.totalorder %s939_s1, %s663_s25  ;;  %s32_s22 = int_to_ptr.vmem [resolvable:$true] %s31_s22 }
   0x5   :  { %p667_p1 = scmp.lt.u32.totalorder %s663_s25, %s939_s1 }
   0x7   :  { %p669_p2 = pnand %p667_p1, %p664_p0 }
   0x9   :  { %672 = shalt.err (!%p669_p2)
}
   0xa   :  { %s673_s30 = scalar_lea.vmem %s32_s22, 64  ;;  %p678_p4 = scmp.lt.s32.totalorder %s32_s22, %s32_s22 }
   0xb   :  { %p674_p3 = scmp.ne.s32.totalorder %s32_s22, %s673_s30  ;;  %p679_p5 = scmp.lt.s32.totalorder %s673_s30, %s673_s30 }
   0xd   :  { %p680_p6 = por %p679_p5, %p678_p4 }
   0xf   :  { %p681_p7 = pnand %p680_p6, %p674_p3 }
  0x11   :  { %684 = shalt.err (!%p681_p7)
}
  0x12   :  { %34 = dma.hbm_to_vmem [thread:$0]  %s939_s1, 64, %s32_s22, [#allocation6]  }
  0x13   :  { %s804_s9 = smov [#allocation8]   ;;  %s805_s11 = smov [#allocation2]  }
  0x14   :  { %s52_s10 = sshll.u32 %s804_s9, 4  ;;  %s21_s12 = sshll.u32 %s805_s11, 4  ;;  %s53_s10 = int_to_ptr.vmem [resolvable:$true] %s52_s10  ;;  %s22_s12 = int_to_ptr.vmem [resolvable:$true] %s21_s12 }
  0x15   :  { %s685_s15 = scalar_lea.hbm %s941_s3, 256 }
  0x16   :  { %p686_p8 = scmp.ne.s32.totalorder %s941_s3, %s685_s15  ;;  %p689_p9 = scmp.lt.u32.totalorder %s685_s15, %s941_s3 }
  0x18   :  { %p691_p10 = pnand %p689_p9, %p686_p8 }
  0x1a   :  { %694 = shalt.err (!%p691_p10)
}
  0x1b   :  { %s695_s1 = scalar_lea.vmem %s53_s10, 256  ;;  %p700_p12 = scmp.lt.s32.totalorder %s53_s10, %s53_s10 }
  0x1c   :  { %p696_p11 = scmp.ne.s32.totalorder %s53_s10, %s695_s1  ;;  %p701_p13 = scmp.lt.s32.totalorder %s695_s1, %s695_s1 }
  0x1e   :  { %p702_p0 = por %p701_p13, %p700_p12 }
  0x20   :  { %p703_p1 = pnand %p702_p0, %p696_p11 }
  0x22   :  { %706 = shalt.err (!%p703_p1)
}
  0x23   :  { %s806_s20 = smov 128   ;;  %s807_s21 = smov 8  }
  0x24   :  { %58 = dma.hbm_to_vmem [thread:$0]  %s941_s3, 256, %s53_s10, [#allocation9], %s806_s20, %s806_s20, %s807_s21  }
  0x25   :  { %s707_s26 = scalar_lea.hbm %s938_s0, 64 }
  0x26   :  { %p708_p2 = scmp.ne.s32.totalorder %s938_s0, %s707_s26  ;;  %p711_p3 = scmp.lt.u32.totalorder %s707_s26, %s938_s0 }
  0x28   :  { %p713_p4 = pnand %p711_p3, %p708_p2 }
  0x2a   :  { %716 = shalt.err (!%p713_p4)
}
  0x2b   :  { %s717_s7 = scalar_lea.vmem %s22_s12, 64  ;;  %p722_p6 = scmp.lt.s32.totalorder %s22_s12, %s22_s12 }
  0x2c   :  { %p718_p5 = scmp.ne.s32.totalorder %s22_s12, %s717_s7  ;;  %p723_p7 = scmp.lt.s32.totalorder %s717_s7, %s717_s7 }
  0x2e   :  { %p724_p8 = por %p723_p7, %p722_p6 }
  0x30   :  { %p725_p9 = pnand %p724_p8, %p718_p5 }
  0x32   :  { %728 = shalt.err (!%p725_p9)
}
  0x33   :  { %24 = dma.hbm_to_vmem [thread:$0]  %s938_s0, 64, %s22_s12, [#allocation3]  }
  0x34   :  { %s808_s9 = smov [#allocation7]   ;;  %s809_s11 = smov [#allocation10]  }
  0x35   :  { %s40_s10 = sshll.u32 %s808_s9, 4  ;;  %s64_s13 = sshll.u32 %s809_s11, 4  ;;  %s41_s10 = int_to_ptr.vmem [resolvable:$true] %s40_s10  ;;  %s65_s13 = int_to_ptr.vmem [resolvable:$true] %s64_s13 }
  0x36   :  { %s729_s16 = scalar_lea.hbm %s940_s2, 2048 }
  0x37   :  { %p730_p10 = scmp.ne.s32.totalorder %s940_s2, %s729_s16  ;;  %p733_p11 = scmp.lt.u32.totalorder %s729_s16, %s940_s2 }
  0x39   :  { %p735_p12 = pnand %p733_p11, %p730_p10 }
  0x3b   :  { %738 = shalt.err (!%p735_p12)
}
  0x3c   :  { %s739_s0 = scalar_lea.vmem %s41_s10, 2048  ;;  %p744_p0 = scmp.lt.s32.totalorder %s41_s10, %s41_s10 }
  0x3d   :  { %p740_p13 = scmp.ne.s32.totalorder %s41_s10, %s739_s0  ;;  %p745_p1 = scmp.lt.s32.totalorder %s739_s0, %s739_s0 }
  0x3f   :  { %p746_p2 = por %p745_p1, %p744_p0 }
  0x41   :  { %p747_p3 = pnand %p746_p2, %p740_p13 }
  0x43   :  { %750 = shalt.err (!%p747_p3)
}
  0x44   :  { %46 = dma.hbm_to_vmem [thread:$0]  %s940_s2, 2048, %s41_s10, [#allocation6], %s806_s20, %s806_s20, %s807_s21  }
  0x45   :  { %s751_s25 = scalar_lea.hbm %s942_s4, 2048 }
  0x46   :  { %p752_p4 = scmp.ne.s32.totalorder %s942_s4, %s751_s25  ;;  %p755_p5 = scmp.lt.u32.totalorder %s751_s25, %s942_s4 }
  0x48   :  { %p757_p6 = pnand %p755_p5, %p752_p4 }
  0x4a   :  { %760 = shalt.err (!%p757_p6)
}
  0x4b   :  { %s761_s30 = scalar_lea.vmem %s65_s13, 2048  ;;  %p766_p8 = scmp.lt.s32.totalorder %s65_s13, %s65_s13 }
  0x4c   :  { %p762_p7 = scmp.ne.s32.totalorder %s65_s13, %s761_s30  ;;  %p767_p9 = scmp.lt.s32.totalorder %s761_s30, %s761_s30 }
  0x4e   :  { %p768_p10 = por %p767_p9, %p766_p8 }
  0x50   :  { %p769_p11 = pnand %p768_p10, %p762_p7 }
  0x52   :  { %772 = shalt.err (!%p769_p11)
}
  0x53   :  { %s810_s2 = smov 64   ;;  %s811_s20 = smov 4  }
  0x54   :  { %70 = dma.hbm_to_vmem [thread:$0]  %s942_s4, 2048, %s65_s13, [#allocation9], %s810_s2, %s810_s2, %s811_s20  }
  0x55   :  { %795 = dma.done.wait [#allocation3], 64  }
  0x56   :  { %796 = vsyncadd [#allocation3], 4294967232 }
  0x57   :  { %797 = dma.done.wait [#allocation6], 2112  }
  0x58   :  { %798 = vsyncadd [#allocation6], 4294965184 }
  0x59   :  { %799 = dma.done.wait [#allocation9], 2304  }
  0x5a   :  { %800 = vsyncadd [#allocation9], 4294964992  ;;  %v812_v0 = vmov 0   ;;  %v813_v1 = vmov 1   ;;  %v91_v2 = vld [vmem:[#allocation5] sm:$0xf]  ;;  %v92_v26 = vlaneseq }
  0x5b   :  { %614 = vset.pattern.permute.xlu0 %v812_v0  ;;  %615 = vset.pattern.permute.xlu1 %v813_v1  ;;  %v109_v3 = vadd.s32 4, %v91_v2  ;;  %vm94_vm0 = vcmp.ge.s32.totalorder %v91_v2, 0  ;;  %vm95_vm1 = vcmp.lt.s32.totalorder %v91_v2, 4  ;;  %v121_v5 = vadd.s32 8, %v91_v2  ;;  %v620_v9 = vld [vmem:[#allocation8 + $0x4] ss:$8 sps:$4 sm:$0xff]  }
  0x5c   :  { %210 = vmatprep.mubr.bf16.mxu0 %v812_v0  ;;  %98 = vperm.xlu0 %614, %v91_v2   ;;  %vm96_vm2 = vmand %vm94_vm0, %vm95_vm1  ;;  %v133_v6 = vadd.s32 12, %v91_v2  ;;  %v814_v7 = vmov 2   ;;  %v815_v8 = vmov 3   ;;  %v622_v10 = vld [vmem:[#allocation8] ss:$8 sps:$4 sm:$0xff]   ;;  %v647_v12 = vld [vmem:[#allocation10 + $0x40] sm:$0xff]  }
  0x5d   :  { %111 = vperm.xlu1 %615, %v109_v3   ;;  %v101_v4 = vsel %vm96_vm2, 1, %v812_v0  ;;  %178 = vmatprep.subr.bf16.mxu0 %v620_v9  ;;  %v625_v11 = vld [vmem:[#allocation7 + $0x4] ss:$8 sps:$4 sm:$0xff]   ;;  %v648_v13 = vld [vmem:[#allocation10] sm:$0xff]   ;;  %v649_v14 = vld [vmem:[#allocation10 + $0x48] sm:$0xff]   ;;  %v93_v28 = vand.u32 127, %v92_v26 }
  0x5e   :  { %179 = vmatpush1.bf16.msra.mxu0 %v622_v10  ;;  %573 = vmatprep.subr.bf16.mxu1 %v647_v12  ;;  %v650_v15 = vld [vmem:[#allocation10 + $0x8] sm:$0xff]   ;;  %v651_v16 = vld [vmem:[#allocation10 + $0x50] sm:$0xff]   ;;  %v653_v18 = vld [vmem:[#allocation10 + $0x58] sm:$0xff]   ;;  %v816_v33 = vmov 0.0   ;;  %vm174_vm15 = vcmask 130048   ;;  %s817_s8 = smov [#allocation11]  }
  0x5f   :  { %299 = vmatprep.subr.bf16.mxu0 %v625_v11  ;;  %574 = vmatpush3.bf16.msra.mxu1 %v648_v13  ;;  %v652_v17 = vld [vmem:[#allocation10 + $0x10] sm:$0xff]   ;;  %v654_v19 = vld [vmem:[#allocation10 + $0x18] sm:$0xff]   ;;  %v655_v20 = vld [vmem:[#allocation10 + $0x60] sm:$0xff]   ;;  %s526_s9 = sshll.u32 %s817_s8, 4  ;;  %s527_s9 = int_to_ptr.vmem [resolvable:$true] %s526_s9 }
  0x60   :  { %103 = vperm.xlu0 %614, %v101_v4   ;;  %575 = vmatprep.subr.bf16.mxu1 %v649_v14  ;;  %v656_v21 = vld [vmem:[#allocation10 + $0x20] sm:$0xff]   ;;  %v657_v22 = vld [vmem:[#allocation10 + $0x68] sm:$0xff]   ;;  %v659_v24 = vld [vmem:[#allocation10 + $0x70] sm:$0xff]   ;;  %s773_s10 = scalar_lea.vmem %s527_s9, 64  ;;  %p778_p13 = scmp.lt.s32.totalorder %s527_s9, %s527_s9 }
  0x61   :  { %115 = vperm.xlu1 %615, %v101_v4   ;;  %v658_v23 = vld [vmem:[#allocation10 + $0x28] sm:$0xff]   ;;  %v623_v43 = vld [vmem:[#allocation7] ss:$8 sps:$4 sm:$0xff]   ;;  %v631_v47 = vld [vmem:[#allocation7 + $0x24] ss:$8 sps:$4 sm:$0xff]   ;;  %p774_p12 = scmp.ne.s32.totalorder %s527_s9, %s773_s10  ;;  %p779_p0 = scmp.lt.s32.totalorder %s773_s10, %s773_s10 }
  0x62   :  { %v628_v45 = vld [vmem:[#allocation7 + $0x14] ss:$8 sps:$4 sm:$0xff]   ;;  %v626_v46 = vld [vmem:[#allocation7 + $0x10] ss:$8 sps:$4 sm:$0xff]   ;;  %v629_v48 = vld [vmem:[#allocation7 + $0x20] ss:$8 sps:$4 sm:$0xff]  }
  0x63   :  { %576 = vmatpush3.bf16.msra.mxu1 %v650_v15  ;;  %v634_v49 = vld [vmem:[#allocation7 + $0x34] ss:$8 sps:$4 sm:$0xff]   ;;  %v632_v50 = vld [vmem:[#allocation7 + $0x30] ss:$8 sps:$4 sm:$0xff]   ;;  %v637_v51 = vld [vmem:[#allocation7 + $0x44] ss:$8 sps:$4 sm:$0xff]   ;;  %p780_p1 = por %p779_p0, %p778_p13 }
  0x64   :  { %616 = vset.pattern.permute.xlu0 %v814_v7  ;;  %577 = vmatprep.subr.bf16.mxu1 %v651_v16  ;;  %v635_v52 = vld [vmem:[#allocation7 + $0x40] ss:$8 sps:$4 sm:$0xff]   ;;  %v640_v53 = vld [vmem:[#allocation7 + $0x54] ss:$8 sps:$4 sm:$0xff]   ;;  %v638_v54 = vld [vmem:[#allocation7 + $0x50] ss:$8 sps:$4 sm:$0xff]  }
  0x65   :  { %123 = vperm.xlu0 %616, %v121_v5   ;;  %617 = vset.pattern.permute.xlu1 %v814_v7  ;;  %v643_v55 = vld [vmem:[#allocation7 + $0x64] ss:$8 sps:$4 sm:$0xff]   ;;  %v641_v56 = vld [vmem:[#allocation7 + $0x60] ss:$8 sps:$4 sm:$0xff]   ;;  %v646_v57 = vld [vmem:[#allocation7 + $0x74] ss:$8 sps:$4 sm:$0xff]   ;;  %p781_p2 = pnand %p780_p1, %p774_p12 }
  0x66   :  { %127 = vperm.xlu1 %617, %v101_v4   ;;  %v644_v58 = vld [vmem:[#allocation7 + $0x70] ss:$8 sps:$4 sm:$0xff]   ;;  %v660_v61 = vld [vmem:[#allocation10 + $0x30] sm:$0xff]   ;;  %v661_v62 = vld [vmem:[#allocation10 + $0x78] sm:$0xff]  }
  0x67   :  { %578 = vmatpush3.bf16.msra.mxu1 %v652_v17  ;;  %v89_v59 = vld [vmem:[#allocation2] sm:$0xf]  ;;  %v662_v63 = vld [vmem:[#allocation10 + $0x38] sm:$0xff]  }
  0x68   :  { %579 = vmatprep.subr.bf16.mxu1 %v653_v18  ;;  %v90_v60 = vpack.c.bf16 %v89_v59, %v89_v59  ;;  %v556_v9 = vld [vmem:[%s943_s5] ss:$0 sm:$0xff] }
  0x69   :  { %619 = vset.pattern.permute.xlu0 %v815_v8 }
  0x6a   :  { %139 = vperm.xlu0 %619, %v101_v4   ;;  %618 = vset.pattern.permute.xlu1 %v815_v8 }
  0x6b   :  { %135 = vperm.xlu1 %618, %v133_v6   ;;  %580 = vmatpush3.bf16.msra.mxu1 %v654_v19 }
  0x6c   :  { %581 = vmatprep.subr.bf16.mxu1 %v655_v20 }
  0x6f   :  { %582 = vmatpush3.bf16.msra.mxu1 %v656_v21 }
  0x70   :  { %583 = vmatprep.subr.bf16.mxu1 %v657_v22 }
  0x73   :  { %584 = vmatpush3.bf16.msra.mxu1 %v658_v23 }
  0x74   :  { %585 = vmatprep.subr.bf16.mxu1 %v659_v24 }
  0x77   :  { %586 = vmatpush3.bf16.msra.mxu1 %v660_v61 }
  0x78   :  { %587 = vmatprep.subr.bf16.mxu1 %v661_v62 }
  0x7b   :  { %588 = vmatpush3.bf16.msra.mxu1 %v662_v63 }
  0xdb   :  { %v99_v25 = vpop.permute.xlu0 %98 }
  0xdc   :  { %v112_v27 = vpop.permute.xlu1 %111  ;;  %vm100_vm8 = vcmp.eq.s32.totalorder %v93_v28, %v99_v25 }
  0xdd   :  { %vm113_vm4 = vcmp.eq.s32.totalorder %v93_v28, %v112_v27 }
  0xdf   :  { %v104_v29 = vpop.permute.xlu0 %103 }
  0xe0   :  { %v116_v30 = vpop.permute.xlu1 %115  ;;  %vm105_vm5 = vcmp.eq.s32.totalorder %v104_v29, 1 }
  0xe1   :  { %vm117_vm3 = vcmp.eq.s32.totalorder %v116_v30, 1  ;;  %vm106_vm9 = vmand %vm105_vm5, %vm100_vm8 }
  0xe2   :  { %vm118_vm6 = vmand %vm117_vm3, %vm113_vm4  ;;  %v107_v36 = vsel %vm106_vm9, 1.0, %v816_v33 }
  0xe3   :  { %v119_v34 = vsel %vm118_vm6, 1.0, %v816_v33 }
  0xe4   :  { %v124_v31 = vpop.permute.xlu0 %123  ;;  %v120_v38 = vadd.f32 %v119_v34, %v107_v36 }
  0xe5   :  { %vm125_vm7 = vcmp.eq.s32.totalorder %v93_v28, %v124_v31  ;;  %v128_v32 = vpop.permute.xlu1 %127 }
  0xe6   :  { %vm129_vm10 = vcmp.eq.s32.totalorder %v128_v32, 1 }
  0xe7   :  { %vm130_vm11 = vmand %vm129_vm10, %vm125_vm7 }
  0xe8   :  { %v131_v37 = vsel %vm130_vm11, 1.0, %v816_v33 }
  0xe9   :  { %v140_v35 = vpop.permute.xlu0 %139  ;;  %v132_v40 = vadd.f32 %v131_v37, %v120_v38 }
  0xea   :  { %vm141_vm12 = vcmp.eq.s32.totalorder %v140_v35, 1  ;;  %v136_v39 = vpop.permute.xlu1 %135 }
  0xeb   :  { %vm137_vm13 = vcmp.eq.s32.totalorder %v93_v28, %v136_v39 }
  0xec   :  { %vm142_vm14 = vmand %vm141_vm12, %vm137_vm13 }
  0xed   :  { %v143_v41 = vsel %vm142_vm14, 1.0, %v816_v33 }
  0xee   :  { %v144_v42 = vadd.f32 %v143_v41, %v132_v40 }
  0xf0   :  { %v145_v44 = vpack.c.bf16 %v144_v42, %v144_v42 }
  0xf2   :  { %539 = vmatmul.mubr.msk.bf16.vlgmr.msra.gmra.mrb[0].mxu0 %vm174_vm15, %v145_v44 }
  0xf3   :  { %300 = vmatpush1.bf16.msra.mxu0 %v623_v43  ;;  %331 = vmatprep.mubr.bf16.mxu0 %v812_v0 }
  0xf4   :  { %301 = vmatprep.subr.bf16.mxu0 %v628_v45 }
  0xf7   :  { %302 = vmatpush1.bf16.msra.mxu0 %v626_v46 }
  0xf8   :  { %303 = vmatprep.subr.bf16.mxu0 %v631_v47 }
  0xfb   :  { %304 = vmatpush1.bf16.msra.mxu0 %v629_v48 }
  0xfc   :  { %305 = vmatprep.subr.bf16.mxu0 %v634_v49 }
  0xff   :  { %306 = vmatpush1.bf16.msra.mxu0 %v632_v50 }
 0x100   :  { %307 = vmatprep.subr.bf16.mxu0 %v637_v51 }
 0x103   :  { %308 = vmatpush1.bf16.msra.mxu0 %v635_v52 }
 0x104   :  { %309 = vmatprep.subr.bf16.mxu0 %v640_v53 }
 0x107   :  { %310 = vmatpush1.bf16.msra.mxu0 %v638_v54 }
 0x108   :  { %311 = vmatprep.subr.bf16.mxu0 %v643_v55 }
 0x10b   :  { %312 = vmatpush1.bf16.msra.mxu0 %v641_v56 }
 0x10c   :  { %313 = vmatprep.subr.bf16.mxu0 %v646_v57 }
 0x10f   :  { %314 = vmatpush1.bf16.msra.mxu0 %v644_v58 }
 0x112   :  { %332 = vmatmul.mubr.bf16.vlgmr.msra.gmra.mrb[0].mxu0 %v90_v60 }
 0x1e5   :  { %v333_v0 = vpop.f32.mrb[0].mxu0 }
 0x1e6   :  { %v340_v1 = vmax.f32 %v333_v0, 0.0  ;;  %v335_v2 = vpop.f32.mrb[1].mxu0 }
 0x1e7   :  { %v337_v3 = vpop.f32.mrb[2].mxu0  ;;  %v341_v4 = vmax.f32 %v335_v2, 0.0 }
 0x1e8   :  { %v338_v5 = vpop.f32.mrb[3].mxu0  ;;  %v342_v7 = vpack.c.bf16 %v340_v1, %v340_v1 }
 0x1e9   :  { %v343_v6 = vpack.c.bf16 %v341_v4, %v341_v4 }
 0x1eb   :  { %511 = vmatprep.mubr.bf16.mxu1 %v343_v6 }
 0x1ec   :  { %512 = vmatmul.mubr.bf16.vlgmr.msra.gmra.mrb[0].mxu1 %v342_v7 }
 0x2bf   :  { %v589_v8 = vpop.f32.mrb[0].mxu1 }
 0x2c0   :  { %v590_v10 = vpop.f32.mrb[1].mxu1 }
 0x2c1   :  { %v591_v11 = vadd.f32 %v590_v10, %v589_v8  ;;  %v592_v12 = vpop.f32.mrb[2].mxu1 }
 0x2c2   :  { %v593_v13 = vpop.f32.mrb[3].mxu1 }
 0x2c3   :  { %v514_v14 = vadd.f32 %v591_v11, %v556_v9 }
 0x2c5   :  { %519 = vst [vmem:[#allocation11] sm:$0xf] %v514_v14 }
 0x2c6   :  { %784 = shalt.err (!%p781_p2)
}
 0x2c7   :  { %s785_s5 = scalar_lea.hbm %s944_s6, 64 }
 0x2c8   :  { %p786_p3 = scmp.ne.s32.totalorder %s944_s6, %s785_s5  ;;  %p789_p4 = scmp.lt.u32.totalorder %s785_s5, %s944_s6 }
 0x2ca   :  { %p791_p5 = pnand %p789_p4, %p786_p3 }
 0x2cc   :  { %794 = shalt.err (!%p791_p5)
}
 0x2cd   :  { %529 = dma.vmem_to_hbm [thread:$0]  %s527_s9, 64, %s944_s6, [#allocation4]  }
 0x2ce   :  { %801 = dma.done.wait [#allocation4], 64  }
 0x2cf   :  { %802 = vsyncadd [#allocation4], 4294967232 }
 0x2d0   :  { %533 = vsyncpa [#allocation3], 1 }
 0x2d1   :  { %534 = vsyncpa [#allocation6], 1 }
 0x2d2   :  { %535 = vsyncpa [#allocation9], 1 }
 0x2d3   :  { %536 = vsyncpa [#allocation4], 1 }

</bundles_post_ra>
